<compile_context>
chip_gen: v7x
topology: tpu7x:2x2x1
jax: 0.10.0
libtpu: 0.0.40
codegen_flags: <defaults>
</compile_context>

<pallas_src>
import functools

import jax
import jax.numpy as jnp
from jax.experimental import pallas as pl
from jax.experimental.pallas import tpu as pltpu


def dqn_kernel(x_ref, w1_ref, w2_ref, w3_ref, bias_ref, o_ref):
    """Fused 3-layer MLP: relu(x@W1+b1) -> relu(.@W2+b2) -> .@W3+b3.

    Weights are bf16 (lane-padded), biases f32, accumulation f32 on the MXU.
    The output store width is whatever o_ref provides (padded 128-wide or compact O).
    """
    Hp = w1_ref.shape[1]          # hidden dim, padded to a lane multiple
    Op = w3_ref.shape[1]          # output dim, padded to a lane multiple
    cdt = w1_ref.dtype            # compute dtype of MXU operands (bf16)

    x = x_ref[...].astype(cdt)
    b1 = bias_ref[0:1, :Hp]       # lane-aligned static slices (Hp/Op are 128-multiples)
    b2 = bias_ref[1:2, :Hp]
    b3 = bias_ref[2:3, :Op]

    h1 = jnp.dot(x, w1_ref[...], preferred_element_type=jnp.float32) + b1
    h1 = jnp.maximum(h1, 0.0)
    h2 = jnp.dot(h1.astype(cdt), w2_ref[...], preferred_element_type=jnp.float32) + b2
    h2 = jnp.maximum(h2, 0.0)
    out = jnp.dot(h2.astype(cdt), w3_ref[...], preferred_element_type=jnp.float32) + b3

    o_ref[...] = out[:, : o_ref.shape[-1]].astype(o_ref.dtype)


def _round_up(n, m):
    return ((n + m - 1) // m) * m


def prepare_params(params, *, lane=128, weight_dtype=jnp.bfloat16):
    """One-time layout prep (do NOT call per forward).

    PyTorch convention weights (out, in) / (out,) ->
      w1t: (I, Hp)  w2t: (Hp, Hp)  w3t: (Hp, Op)  bias: (3, max(Hp, Op)) f32
    with H and O zero-padded up to `lane` multiples so every MXU operand, bias load,
    ReLU and output store is lane-dense.  Weights are cast to bf16 (native MXU dtype).
    On v6e/v7x with large H, lane=256 aligns to the 2x256^2 MXU.
    Padded lanes are exactly zero end-to-end, so slicing the output is safe.
    """
    w1, b1 = params["w1"], params["b1"]   # (H, I), (H,)
    w2, b2 = params["w2"], params["b2"]   # (H, H), (H,)
    w3, b3 = params["w3"], params["b3"]   # (O, H), (O,)

    H, I = w1.shape
    O = w3.shape[0]
    Hp = _round_up(max(H, lane), lane)
    Op = _round_up(max(O, lane), lane)
    W = max(Hp, Op)

    w1t = jnp.zeros((I, Hp), weight_dtype).at[:, :H].set(jnp.asarray(w1.T, weight_dtype))
    w2t = jnp.zeros((Hp, Hp), weight_dtype).at[:H, :H].set(jnp.asarray(w2.T, weight_dtype))
    w3t = jnp.zeros((Hp, Op), weight_dtype).at[:H, :O].set(jnp.asarray(w3.T, weight_dtype))

    bias = jnp.zeros((3, W), jnp.float32)
    bias = bias.at[0, :H].set(b1).at[1, :H].set(b2).at[2, :O].set(b3)

    # Arrays only: everything shape-related is recovered statically from .shape.
    return {"w1t": w1t, "w2t": w2t, "w3t": w3t, "bias": bias}


def simple_dqn_forward(x, prep, *, output_size, tb_max=512,
                       compact_output=None, single_buffer_weights=True):
    """x: (B, input_size) f32.  prep: output of prepare_params.  output_size: static int."""
    w1, w2, w3, bias = prep["w1t"], prep["w2t"], prep["w3t"], prep["bias"]
    B, I = x.shape
    Op = w3.shape[1]
    O = int(output_size)

    # Large replay batches: emit a compact (B, O) output to avoid ~32x padded HBM
    # writeback at O=4.  Small batches keep the lane-dense padded store + wrapper slice.
    # TODO(synk): for best large-B perf, fuse the downstream TD-target/loss consumer.
    if compact_output is None:
        compact_output = B >= 512
    out_w = O if compact_output else Op

    # Batch tiling: one tile for tiny batches; otherwise >=2 tiles (rows a multiple of 8)
    # so dimension_semantics=("parallel",) can shard across v7x's 2 TensorCores.
    if B <= 8:
        TB = B
    else:
        TB = min(tb_max, _round_up(pl.cdiv(B, 2), 8))
    grid = (pl.cdiv(B, TB),)

    # Weights/bias stay resident in VMEM across all grid steps (constant block index).
    # Buffered(1): no pointless double-buffering of the resident weights.
    if single_buffer_weights:
        resident = lambda shape: pl.BlockSpec(shape, lambda i: (0, 0),
                                              pipeline_mode=pl.Buffered(1))
        n_wbuf = 1
    else:
        resident = lambda shape: pl.BlockSpec(shape, lambda i: (0, 0))
        n_wbuf = 2

    # VMEM budget: resident weights/bias (+ double-buffered x/out tiles) with headroom.
    resident_bytes = n_wbuf * sum(int(a.size) * a.dtype.itemsize for a in (w1, w2, w3, bias))
    stream_bytes = 2 * (TB * I + TB * out_w) * x.dtype.itemsize
    vmem_limit = int(min(100 << 20, max(resident_bytes + stream_bytes + (4 << 20), 16 << 20)))

    out = pl.pallas_call(
        dqn_kernel,
        out_shape=jax.ShapeDtypeStruct((B, out_w), x.dtype),
        grid=grid,
        in_specs=[
            pl.BlockSpec((TB, I), lambda i: (i, 0)),
            resident(w1.shape),
            resident(w2.shape),
            resident(w3.shape),
            resident(bias.shape),
        ],
        out_specs=pl.BlockSpec((TB, out_w), lambda i: (i, 0)),
        compiler_params=pltpu.CompilerParams(
            dimension_semantics=("parallel",),
            vmem_limit_bytes=vmem_limit,
        ),
    )(x, w1, w2, w3, bias)

    return out if compact_output else out[:, :O]


def init_params(key, input_size, hidden_size, output_size):
    """Deterministic init mimicking torch.nn.Linear default (uniform +/- 1/sqrt(fan_in))."""
    ks = jax.random.split(key, 6)

    def lin(kw, kb, fan_in, fan_out):
        bound = 1.0 / jnp.sqrt(fan_in)
        w = jax.random.uniform(kw, (fan_out, fan_in), jnp.float32, -bound, bound)
        b = jax.random.uniform(kb, (fan_out,), jnp.float32, -bound, bound)
        return w, b

    w1, b1 = lin(ks[0], ks[1], input_size, hidden_size)
    w2, b2 = lin(ks[2], ks[3], hidden_size, hidden_size)
    w3, b3 = lin(ks[4], ks[5], hidden_size, output_size)
    return {"w1": w1, "b1": b1, "w2": w2, "b2": b2, "w3": w3, "b3": b3}


def reference_forward(x, p):
    h = jnp.maximum(x @ p["w1"].T + p["b1"], 0.0)
    h = jnp.maximum(h @ p["w2"].T + p["b2"], 0.0)
    return h @ p["w3"].T + p["b3"]


if __name__ == "__main__":
    key = jax.random.PRNGKey(0)
    k_in, k_par = jax.random.split(key)

    batch, input_size, hidden_size, output_size = 8, 16, 32, 4
    x = jax.random.normal(k_in, (batch, input_size), jnp.float32)
    params = init_params(k_par, input_size, hidden_size, output_size)

    # Layout prep happens once, outside the hot forward path.
    prep = prepare_params(params)
    ref = reference_forward(x, params)

    def run(single_buffer_weights):
        fwd = jax.jit(functools.partial(
            simple_dqn_forward, output_size=output_size,
            single_buffer_weights=single_buffer_weights))
        out_padded = jax.block_until_ready(fwd(x, prep))
        # Also exercise the compact-output (large replay batch) store path.
        fwd_compact = jax.jit(functools.partial(
            simple_dqn_forward, output_size=output_size, compact_output=True,
            single_buffer_weights=single_buffer_weights))
        out_compact = jax.block_until_ready(fwd_compact(x, prep))
        return out_padded, out_compact

    try:
        out, out_c = run(single_buffer_weights=True)
    except Exception:
        # Fallback for JAX builds that reject pl.Buffered(1) resident-weight specs:
        # use the default double-buffered weights (functionally identical).
        out, out_c = run(single_buffer_weights=False)

    assert out.shape == (batch, output_size)
    assert out_c.shape == (batch, output_size)
    # bf16 weights on the MXU (f32 accumulate) => loosened tolerance vs the f32 reference.
    assert jnp.allclose(out, ref, atol=5e-2, rtol=5e-2), "mismatch vs JAX reference"
    assert jnp.allclose(out_c, ref, atol=5e-2, rtol=5e-2), "compact path mismatch vs reference"
    assert jnp.allclose(out, out_c, atol=1e-6, rtol=1e-6), "padded vs compact store disagree"

    print("KERNEL_OK")
</pallas_src>

<mosaic_0001>
module attributes {stable_mosaic.version = 11 : i64} {
  func.func @dqn_kernel(%arg0: i32, %arg1: memref<8x16xf32, #tpu.memory_space<vmem>>, %arg2: memref<16x128xbf16, #tpu.memory_space<vmem>>, %arg3: memref<128x128xbf16, #tpu.memory_space<vmem>>, %arg4: memref<128x128xbf16, #tpu.memory_space<vmem>>, %arg5: memref<3x128xf32, #tpu.memory_space<vmem>>, %arg6: memref<8x128xf32, #tpu.memory_space<vmem>>) attributes {dimension_semantics = [#tpu.dimension_semantics<parallel>], iteration_bounds = array<i64: 1>, scalar_prefetch = 0 : i64, scratch_operands = 0 : i64, tpu.core_type = #tpu.core_type<tc>, window_params = [{transform_indices = @transform_0, window_bounds = array<i64: 8, 16>}, {pipeline_mode = #tpu.pipeline_mode<synchronous>, transform_indices = @transform_1, window_bounds = array<i64: 16, 128>}, {pipeline_mode = #tpu.pipeline_mode<synchronous>, transform_indices = @transform_2, window_bounds = array<i64: 128, 128>}, {pipeline_mode = #tpu.pipeline_mode<synchronous>, transform_indices = @transform_3, window_bounds = array<i64: 128, 128>}, {pipeline_mode = #tpu.pipeline_mode<synchronous>, transform_indices = @transform_4, window_bounds = array<i64: 3, 128>}, {transform_indices = @transform_5, window_bounds = array<i64: 8, 128>}]} {
    %c0 = arith.constant 0 : index
    %c0_0 = arith.constant 0 : index
    %0 = vector.load %arg1[%c0, %c0_0] : memref<8x16xf32, #tpu.memory_space<vmem>>, vector<8x16xf32>
    %1 = arith.truncf %0 : vector<8x16xf32> to vector<8x16xbf16>
    %c0_1 = arith.constant 0 : index
    %c0_2 = arith.constant 0 : index
    %2 = vector.load %arg5[%c0_1, %c0_2] : memref<3x128xf32, #tpu.memory_space<vmem>>, vector<1x128xf32>
    %c1 = arith.constant 1 : index
    %c0_3 = arith.constant 0 : index
    %3 = vector.load %arg5[%c1, %c0_3] : memref<3x128xf32, #tpu.memory_space<vmem>>, vector<1x128xf32>
    %c2 = arith.constant 2 : index
    %c0_4 = arith.constant 0 : index
    %4 = vector.load %arg5[%c2, %c0_4] : memref<3x128xf32, #tpu.memory_space<vmem>>, vector<1x128xf32>
    %c0_5 = arith.constant 0 : index
    %c0_6 = arith.constant 0 : index
    %5 = vector.load %arg2[%c0_5, %c0_6] : memref<16x128xbf16, #tpu.memory_space<vmem>>, vector<16x128xbf16>
    %cst = arith.constant dense<0.000000e+00> : vector<8x128xf32>
    %6 = tpu.matmul %1, %5, %cst {dimension_numbers = #tpu.dot_dimension_numbers<[1], [0], [0], [1], [0, 0, 1, 1], [], []>} : vector<8x16xbf16>, vector<16x128xbf16>, vector<8x128xf32> -> vector<8x128xf32>
    %7 = vector.broadcast %2 : vector<1x128xf32> to vector<8x128xf32>
    %8 = arith.addf %6, %7 : vector<8x128xf32>
    %cst_7 = arith.constant 0.000000e+00 : f32
    %9 = vector.broadcast %cst_7 : f32 to vector<8x128xf32>
    %10 = arith.maximumf %8, %9 : vector<8x128xf32>
    %11 = arith.truncf %10 : vector<8x128xf32> to vector<8x128xbf16>
    %c0_8 = arith.constant 0 : index
    %c0_9 = arith.constant 0 : index
    %12 = vector.load %arg3[%c0_8, %c0_9] : memref<128x128xbf16, #tpu.memory_space<vmem>>, vector<128x128xbf16>
    %cst_10 = arith.constant dense<0.000000e+00> : vector<8x128xf32>
    %13 = tpu.matmul %11, %12, %cst_10 {dimension_numbers = #tpu.dot_dimension_numbers<[1], [0], [0], [1], [0, 0, 1, 1], [], []>} : vector<8x128xbf16>, vector<128x128xbf16>, vector<8x128xf32> -> vector<8x128xf32>
    %14 = vector.broadcast %3 : vector<1x128xf32> to vector<8x128xf32>
    %15 = arith.addf %13, %14 : vector<8x128xf32>
    %cst_11 = arith.constant 0.000000e+00 : f32
    %16 = vector.broadcast %cst_11 : f32 to vector<8x128xf32>
    %17 = arith.maximumf %15, %16 : vector<8x128xf32>
    %18 = arith.truncf %17 : vector<8x128xf32> to vector<8x128xbf16>
    %c0_12 = arith.constant 0 : index
    %c0_13 = arith.constant 0 : index
    %19 = vector.load %arg4[%c0_12, %c0_13] : memref<128x128xbf16, #tpu.memory_space<vmem>>, vector<128x128xbf16>
    %cst_14 = arith.constant dense<0.000000e+00> : vector<8x128xf32>
    %20 = tpu.matmul %18, %19, %cst_14 {dimension_numbers = #tpu.dot_dimension_numbers<[1], [0], [0], [1], [0, 0, 1, 1], [], []>} : vector<8x128xbf16>, vector<128x128xbf16>, vector<8x128xf32> -> vector<8x128xf32>
    %21 = vector.broadcast %4 : vector<1x128xf32> to vector<8x128xf32>
    %22 = arith.addf %20, %21 : vector<8x128xf32>
    %c0_15 = arith.constant 0 : index
    %c0_16 = arith.constant 0 : index
    %23 = vector.load %arg6[%c0_15, %c0_16] : memref<8x128xf32, #tpu.memory_space<vmem>>, vector<8x128xf32>
    tpu.vector_store %arg6[%c0_15, %c0_16], %22 {strides = array<i32>} : memref<8x128xf32, #tpu.memory_space<vmem>>, vector<8x128xf32>,
    return
  }
  func.func @transform_0(%arg0: i32) -> (i32, i32) {
    %c0_i32 = arith.constant 0 : i32
    %c0_i32_0 = arith.constant 0 : i32
    return %arg0, %c0_i32 : i32, i32
  }
  func.func @transform_1(%arg0: i32) -> (i32, i32) {
    %c0_i32 = arith.constant 0 : i32
    %c0_i32_0 = arith.constant 0 : i32
    %c0_i32_1 = arith.constant 0 : i32
    return %c0_i32, %c0_i32_0 : i32, i32
  }
  func.func @transform_2(%arg0: i32) -> (i32, i32) {
    %c0_i32 = arith.constant 0 : i32
    %c0_i32_0 = arith.constant 0 : i32
    %c0_i32_1 = arith.constant 0 : i32
    return %c0_i32, %c0_i32_0 : i32, i32
  }
  func.func @transform_3(%arg0: i32) -> (i32, i32) {
    %c0_i32 = arith.constant 0 : i32
    %c0_i32_0 = arith.constant 0 : i32
    %c0_i32_1 = arith.constant 0 : i32
    return %c0_i32, %c0_i32_0 : i32, i32
  }
  func.func @transform_4(%arg0: i32) -> (i32, i32) {
    %c0_i32 = arith.constant 0 : i32
    %c0_i32_0 = arith.constant 0 : i32
    %c0_i32_1 = arith.constant 0 : i32
    return %c0_i32, %c0_i32_0 : i32, i32
  }
  func.func @transform_5(%arg0: i32) -> (i32, i32) {
    %c0_i32 = arith.constant 0 : i32
    %c0_i32_0 = arith.constant 0 : i32
    return %arg0, %c0_i32 : i32, i32
  }
}

module attributes {stable_mosaic.version = 11 : i64} {
  func.func @dqn_kernel(%arg0: i32, %arg1: memref<8x16xf32, #tpu.memory_space<vmem>>, %arg2: memref<16x128xbf16, #tpu.memory_space<vmem>>, %arg3: memref<128x128xbf16, #tpu.memory_space<vmem>>, %arg4: memref<128x128xbf16, #tpu.memory_space<vmem>>, %arg5: memref<3x128xf32, #tpu.memory_space<vmem>>, %arg6: memref<8x128xf32, #tpu.memory_space<vmem>>) attributes {dimension_semantics = [#tpu.dimension_semantics<parallel>], iteration_bounds = array<i64: 1>, scalar_prefetch = 0 : i64, scratch_operands = 0 : i64, tpu.core_type = #tpu.core_type<tc>, window_params = [{transform_indices = @transform_0, window_bounds = array<i64: 8, 16>}, {pipeline_mode = #tpu.pipeline_mode<synchronous>, transform_indices = @transform_1, window_bounds = array<i64: 16, 128>}, {pipeline_mode = #tpu.pipeline_mode<synchronous>, transform_indices = @transform_2, window_bounds = array<i64: 128, 128>}, {pipeline_mode = #tpu.pipeline_mode<synchronous>, transform_indices = @transform_3, window_bounds = array<i64: 128, 128>}, {pipeline_mode = #tpu.pipeline_mode<synchronous>, transform_indices = @transform_4, window_bounds = array<i64: 3, 128>}, {transform_indices = @transform_5, window_bounds = array<i64: 8, 128>}]} {
    %c0 = arith.constant 0 : index
    %c0_0 = arith.constant 0 : index
    %0 = vector.load %arg1[%c0, %c0_0] : memref<8x16xf32, #tpu.memory_space<vmem>>, vector<8x16xf32>
    %1 = arith.truncf %0 : vector<8x16xf32> to vector<8x16xbf16>
    %c0_1 = arith.constant 0 : index
    %c0_2 = arith.constant 0 : index
    %2 = vector.load %arg5[%c0_1, %c0_2] : memref<3x128xf32, #tpu.memory_space<vmem>>, vector<1x128xf32>
    %c1 = arith.constant 1 : index
    %c0_3 = arith.constant 0 : index
    %3 = vector.load %arg5[%c1, %c0_3] : memref<3x128xf32, #tpu.memory_space<vmem>>, vector<1x128xf32>
    %c2 = arith.constant 2 : index
    %c0_4 = arith.constant 0 : index
    %4 = vector.load %arg5[%c2, %c0_4] : memref<3x128xf32, #tpu.memory_space<vmem>>, vector<1x128xf32>
    %c0_5 = arith.constant 0 : index
    %c0_6 = arith.constant 0 : index
    %5 = vector.load %arg2[%c0_5, %c0_6] : memref<16x128xbf16, #tpu.memory_space<vmem>>, vector<16x128xbf16>
    %cst = arith.constant dense<0.000000e+00> : vector<8x128xf32>
    %6 = tpu.matmul %1, %5, %cst {dimension_numbers = #tpu.dot_dimension_numbers<[1], [0], [0], [1], [0, 0, 1, 1], [], []>} : vector<8x16xbf16>, vector<16x128xbf16>, vector<8x128xf32> -> vector<8x128xf32>
    %7 = vector.broadcast %2 : vector<1x128xf32> to vector<8x128xf32>
    %8 = arith.addf %6, %7 : vector<8x128xf32>
    %cst_7 = arith.constant 0.000000e+00 : f32
    %9 = vector.broadcast %cst_7 : f32 to vector<8x128xf32>
    %10 = arith.maximumf %8, %9 : vector<8x128xf32>
    %11 = arith.truncf %10 : vector<8x128xf32> to vector<8x128xbf16>
    %c0_8 = arith.constant 0 : index
    %c0_9 = arith.constant 0 : index
    %12 = vector.load %arg3[%c0_8, %c0_9] : memref<128x128xbf16, #tpu.memory_space<vmem>>, vector<128x128xbf16>
    %cst_10 = arith.constant dense<0.000000e+00> : vector<8x128xf32>
    %13 = tpu.matmul %11, %12, %cst_10 {dimension_numbers = #tpu.dot_dimension_numbers<[1], [0], [0], [1], [0, 0, 1, 1], [], []>} : vector<8x128xbf16>, vector<128x128xbf16>, vector<8x128xf32> -> vector<8x128xf32>
    %14 = vector.broadcast %3 : vector<1x128xf32> to vector<8x128xf32>
    %15 = arith.addf %13, %14 : vector<8x128xf32>
    %cst_11 = arith.constant 0.000000e+00 : f32
    %16 = vector.broadcast %cst_11 : f32 to vector<8x128xf32>
    %17 = arith.maximumf %15, %16 : vector<8x128xf32>
    %18 = arith.truncf %17 : vector<8x128xf32> to vector<8x128xbf16>
    %c0_12 = arith.constant 0 : index
    %c0_13 = arith.constant 0 : index
    %19 = vector.load %arg4[%c0_12, %c0_13] : memref<128x128xbf16, #tpu.memory_space<vmem>>, vector<128x128xbf16>
    %cst_14 = arith.constant dense<0.000000e+00> : vector<8x128xf32>
    %20 = tpu.matmul %18, %19, %cst_14 {dimension_numbers = #tpu.dot_dimension_numbers<[1], [0], [0], [1], [0, 0, 1, 1], [], []>} : vector<8x128xbf16>, vector<128x128xbf16>, vector<8x128xf32> -> vector<8x128xf32>
    %21 = vector.broadcast %4 : vector<1x128xf32> to vector<8x128xf32>
    %22 = arith.addf %20, %21 : vector<8x128xf32>
    %c0_15 = arith.constant 0 : index
    %c0_16 = arith.constant 0 : index
    %23 = vector.load %arg6[%c0_15, %c0_16] : memref<8x128xf32, #tpu.memory_space<vmem>>, vector<8x128xf32>
    tpu.vector_store %arg6[%c0_15, %c0_16], %22 {strides = array<i32>} : memref<8x128xf32, #tpu.memory_space<vmem>>, vector<8x128xf32>,
    return
  }
  func.func @transform_0(%arg0: i32) -> (i32, i32) {
    %c0_i32 = arith.constant 0 : i32
    %c0_i32_0 = arith.constant 0 : i32
    return %arg0, %c0_i32 : i32, i32
  }
  func.func @transform_1(%arg0: i32) -> (i32, i32) {
    %c0_i32 = arith.constant 0 : i32
    %c0_i32_0 = arith.constant 0 : i32
    %c0_i32_1 = arith.constant 0 : i32
    return %c0_i32, %c0_i32_0 : i32, i32
  }
  func.func @transform_2(%arg0: i32) -> (i32, i32) {
    %c0_i32 = arith.constant 0 : i32
    %c0_i32_0 = arith.constant 0 : i32
    %c0_i32_1 = arith.constant 0 : i32
    return %c0_i32, %c0_i32_0 : i32, i32
  }
  func.func @transform_3(%arg0: i32) -> (i32, i32) {
    %c0_i32 = arith.constant 0 : i32
    %c0_i32_0 = arith.constant 0 : i32
    %c0_i32_1 = arith.constant 0 : i32
    return %c0_i32, %c0_i32_0 : i32, i32
  }
  func.func @transform_4(%arg0: i32) -> (i32, i32) {
    %c0_i32 = arith.constant 0 : i32
    %c0_i32_0 = arith.constant 0 : i32
    %c0_i32_1 = arith.constant 0 : i32
    return %c0_i32, %c0_i32_0 : i32, i32
  }
  func.func @transform_5(%arg0: i32) -> (i32, i32) {
    %c0_i32 = arith.constant 0 : i32
    %c0_i32_0 = arith.constant 0 : i32
    return %arg0, %c0_i32 : i32, i32
  }
}

</mosaic_0001>

<bundles_post_ra>
// kernel: simple_dqn_forward.1
= control target key start
LH: loop header
LB: loop body
LE: loop exit
PB: predicated region body
PF: predicated region fallthrough
CT: control target
= control target key end

     0   :  { %10 = vsyncpa [#allocation3], 0  ;;  %s734_s0 = inlined_call_operand.hbm [shape: f32[8,16], index: 0, kind: input, shape index: {}]   ;;  %s735_s1 = inlined_call_operand.hbm [shape: bf16[16,128], index: 1, kind: input, shape index: {}]   ;;  %s736_s2 = inlined_call_operand.hbm [shape: bf16[128,128], index: 2, kind: input, shape index: {}]   ;;  %s737_s3 = inlined_call_operand.hbm [shape: bf16[128,128], index: 3, kind: input, shape index: {}]   ;;  %s738_s4 = inlined_call_operand.hbm [shape: f32[3,128], index: 4, kind: input, shape index: {}]   ;;  %s739_s5 = inlined_call_operand.vmem [shape: f32[8,128], index: 5, kind: output, shape index: {}]  }
   0x1   :  { %11 = vsyncpa [#allocation5], 0 }
   0x2   :  { %12 = vsyncpa [#allocation8], 0  ;;  %s603_s18 = smov [#allocation4]   ;;  %s487_s22 = scalar_lea.hbm %s735_s1, 128 }
   0x3   :  { %s28_s19 = sshll.u32 %s603_s18, 4  ;;  %p488_p0 = scmp.ne.s32.totalorder %s735_s1, %s487_s22  ;;  %s29_s19 = int_to_ptr.vmem [resolvable:$true] %s28_s19 }
   0x4   :  { %p491_p1 = scmp.lt.u32.totalorder %s487_s22, %s735_s1 }
   0x6   :  { %p493_p2 = pnand %p491_p1, %p488_p0 }
   0x8   :  { %496 = shalt.err (!%p493_p2)
}
   0x9   :  { %s497_s27 = scalar_lea.vmem %s29_s19, 128  ;;  %p502_p4 = scmp.lt.s32.totalorder %s29_s19, %s29_s19 }
   0xa   :  { %p498_p3 = scmp.ne.s32.totalorder %s29_s19, %s497_s27  ;;  %p503_p5 = scmp.lt.s32.totalorder %s497_s27, %s497_s27 }
   0xc   :  { %p504_p6 = por %p503_p5, %p502_p4 }
   0xe   :  { %p505_p7 = pnand %p504_p6, %p498_p3 }
  0x10   :  { %508 = shalt.err (!%p505_p7)
}
  0x11   :  { %s604_s28 = smov 64   ;;  %s605_s29 = smov 4  }
  0x12   :  { %34 = dma.hbm_to_vmem [thread:$0]  %s735_s1, 128, %s29_s19, [#allocation5], %s604_s28, %s604_s28, %s605_s29  }
  0x13   :  { %s606_s7 = smov [#allocation7]   ;;  %s607_s9 = smov [#allocation2]  }
  0x14   :  { %s52_s8 = sshll.u32 %s606_s7, 4  ;;  %s19_s10 = sshll.u32 %s607_s9, 4  ;;  %s53_s8 = int_to_ptr.vmem [resolvable:$true] %s52_s8  ;;  %s20_s10 = int_to_ptr.vmem [resolvable:$true] %s19_s10 }
  0x15   :  { %s509_s13 = scalar_lea.hbm %s737_s3, 1024 }
  0x16   :  { %p510_p8 = scmp.ne.s32.totalorder %s737_s3, %s509_s13  ;;  %p513_p9 = scmp.lt.u32.totalorder %s509_s13, %s737_s3 }
  0x18   :  { %p515_p10 = pnand %p513_p9, %p510_p8 }
  0x1a   :  { %518 = shalt.err (!%p515_p10)
}
  0x1b   :  { %s519_s1 = scalar_lea.vmem %s53_s8, 1024  ;;  %p524_p12 = scmp.lt.s32.totalorder %s53_s8, %s53_s8 }
  0x1c   :  { %p520_p11 = scmp.ne.s32.totalorder %s53_s8, %s519_s1  ;;  %p525_p13 = scmp.lt.s32.totalorder %s519_s1, %s519_s1 }
  0x1e   :  { %p526_p0 = por %p525_p13, %p524_p12 }
  0x20   :  { %p527_p1 = pnand %p526_p0, %p520_p11 }
  0x22   :  { %530 = shalt.err (!%p527_p1)
}
  0x23   :  { %58 = dma.hbm_to_vmem [thread:$0]  %s737_s3, 1024, %s53_s8, [#allocation8], %s604_s28, %s604_s28, %s605_s29  }
  0x24   :  { %s531_s22 = scalar_lea.hbm %s734_s0, 128 }
  0x25   :  { %p532_p2 = scmp.ne.s32.totalorder %s734_s0, %s531_s22  ;;  %p535_p3 = scmp.lt.u32.totalorder %s531_s22, %s734_s0 }
  0x27   :  { %p537_p4 = pnand %p535_p3, %p532_p2 }
  0x29   :  { %540 = shalt.err (!%p537_p4)
}
  0x2a   :  { %s541_s27 = scalar_lea.vmem %s20_s10, 128  ;;  %p546_p6 = scmp.lt.s32.totalorder %s20_s10, %s20_s10 }
  0x2b   :  { %p542_p5 = scmp.ne.s32.totalorder %s20_s10, %s541_s27  ;;  %p547_p7 = scmp.lt.s32.totalorder %s541_s27, %s541_s27 }
  0x2d   :  { %p548_p8 = por %p547_p7, %p546_p6 }
  0x2f   :  { %p549_p9 = pnand %p548_p8, %p542_p5 }
  0x31   :  { %552 = shalt.err (!%p549_p9)
}
  0x32   :  { %22 = dma.hbm_to_vmem [thread:$0]  %s734_s0, 128, %s20_s10, [#allocation3]  }
  0x33   :  { %s608_s6 = smov [#allocation6]   ;;  %s609_s8 = smov [#allocation9]  }
  0x34   :  { %s40_s7 = sshll.u32 %s608_s6, 4  ;;  %s65_s9 = sshll.u32 %s609_s8, 4  ;;  %s41_s7 = int_to_ptr.vmem [resolvable:$true] %s40_s7  ;;  %s66_s9 = int_to_ptr.vmem [resolvable:$true] %s65_s9 }
  0x35   :  { %s553_s13 = scalar_lea.hbm %s736_s2, 1024 }
  0x36   :  { %p554_p10 = scmp.ne.s32.totalorder %s736_s2, %s553_s13  ;;  %p557_p11 = scmp.lt.u32.totalorder %s553_s13, %s736_s2 }
  0x38   :  { %p559_p12 = pnand %p557_p11, %p554_p10 }
  0x3a   :  { %562 = shalt.err (!%p559_p12)
}
  0x3b   :  { %s563_s0 = scalar_lea.vmem %s41_s7, 1024  ;;  %p568_p0 = scmp.lt.s32.totalorder %s41_s7, %s41_s7 }
  0x3c   :  { %p564_p13 = scmp.ne.s32.totalorder %s41_s7, %s563_s0  ;;  %p569_p1 = scmp.lt.s32.totalorder %s563_s0, %s563_s0 }
  0x3e   :  { %p570_p2 = por %p569_p1, %p568_p0 }
  0x40   :  { %p571_p3 = pnand %p570_p2, %p564_p13 }
  0x42   :  { %574 = shalt.err (!%p571_p3)
}
  0x43   :  { %46 = dma.hbm_to_vmem [thread:$0]  %s736_s2, 1024, %s41_s7, [#allocation5], %s604_s28, %s604_s28, %s605_s29  }
  0x44   :  { %s575_s20 = scalar_lea.hbm %s738_s4, 64 }
  0x45   :  { %p576_p4 = scmp.ne.s32.totalorder %s738_s4, %s575_s20  ;;  %p579_p5 = scmp.lt.u32.totalorder %s575_s20, %s738_s4 }
  0x47   :  { %p581_p6 = pnand %p579_p5, %p576_p4 }
  0x49   :  { %584 = shalt.err (!%p581_p6)
}
  0x4a   :  { %s585_s25 = scalar_lea.vmem %s66_s9, 64  ;;  %p590_p8 = scmp.lt.s32.totalorder %s66_s9, %s66_s9 }
  0x4b   :  { %p586_p7 = scmp.ne.s32.totalorder %s66_s9, %s585_s25  ;;  %p591_p9 = scmp.lt.s32.totalorder %s585_s25, %s585_s25 }
  0x4d   :  { %p592_p10 = por %p591_p9, %p590_p8 }
  0x4f   :  { %p593_p11 = pnand %p592_p10, %p586_p7 }
  0x51   :  { %596 = shalt.err (!%p593_p11)
}
  0x52   :  { %68 = dma.hbm_to_vmem [thread:$0]  %s738_s4, 64, %s66_s9, [#allocation8]  }
  0x53   :  { %597 = dma.done.wait [#allocation3], 128  }
  0x54   :  { %598 = vsyncadd [#allocation3], 4294967168 }
  0x55   :  { %599 = dma.done.wait [#allocation5], 1152  }
  0x56   :  { %600 = vsyncadd [#allocation5], 4294966144 }
  0x57   :  { %601 = dma.done.wait [#allocation8], 1088  }
  0x58   :  { %602 = vsyncadd [#allocation8], 4294966208  ;;  %v610_v0 = vmov 0.0   ;;  %vm611_vm0 = vmmov 0   ;;  %v470_v1 = vld [vmem:[#allocation4] sm:$0xff]   ;;  %v85_v2 = vld [vmem:[#allocation2] sm:$0xff] }
  0x59   :  { %415 = vmatprep.subr.bf16.mxu0 %v610_v0  ;;  %417 = vmatprep.mubr.msk.bf16.mxu0 %vm611_vm0, %v610_v0  ;;  %v86_v3 = vpack.c.bf16 %v85_v2, %v85_v2  ;;  %vm102_vm1 = vcmask 130048   ;;  %v471_v4 = vld [vmem:[#allocation6] sm:$0xff]   ;;  %v472_v5 = vld [vmem:[#allocation6 + $0x8] sm:$0xff]   ;;  %v473_v6 = vld [vmem:[#allocation6 + $0x10] sm:$0xff]  }
  0x5a   :  { %421 = vmatprep.subr.bf16.mxu1 %v610_v0  ;;  %437 = vmatprep.mubr.msk.bf16.mxu1 %vm611_vm0, %v610_v0  ;;  %v474_v7 = vld [vmem:[#allocation6 + $0x18] sm:$0xff]   ;;  %v475_v8 = vld [vmem:[#allocation6 + $0x20] sm:$0xff]   ;;  %v476_v9 = vld [vmem:[#allocation6 + $0x28] sm:$0xff]  }
  0x5b   :  { %416 = vmatpush3.bf16.msra.mxu0 %v470_v1  ;;  %422 = vmatpush3.bf16.msra.mxu1 %v471_v4  ;;  %v477_v10 = vld [vmem:[#allocation6 + $0x30] sm:$0xff]   ;;  %v478_v11 = vld [vmem:[#allocation6 + $0x38] sm:$0xff]   ;;  %v479_v12 = vld [vmem:[#allocation7] sm:$0xff]  }
  0x5c   :  { %441 = vmatprep.subr.bf16.mxu0 %v610_v0  ;;  %423 = vmatprep.subr.bf16.mxu1 %v610_v0  ;;  %v480_v13 = vld [vmem:[#allocation7 + $0x8] sm:$0xff]   ;;  %v481_v14 = vld [vmem:[#allocation7 + $0x10] sm:$0xff]   ;;  %v482_v15 = vld [vmem:[#allocation7 + $0x18] sm:$0xff]  }
  0x5d   :  { %v483_v16 = vld [vmem:[#allocation7 + $0x20] sm:$0xff]   ;;  %v484_v17 = vld [vmem:[#allocation7 + $0x28] sm:$0xff]   ;;  %v485_v26 = vld [vmem:[#allocation7 + $0x30] sm:$0xff]  }
  0x5e   :  { %418 = vmatmul.mubr.msk.bf16.vlgmr.msra.gmra.mrb[0].mxu0 %vm102_vm1, %v86_v3  ;;  %v374_v18 = vld [vmem:[#allocation9] ss:$0 sm:$0xff]  ;;  %v486_v27 = vld [vmem:[#allocation7 + $0x38] sm:$0xff]   ;;  %v377_v28 = vld [vmem:[#allocation9 + $0x1] ss:$0 sm:$0xff] }
  0x5f   :  { %457 = vmatprep.mubr.msk.bf16.mxu0 %vm611_vm0, %v610_v0  ;;  %424 = vmatpush3.bf16.msra.mxu1 %v472_v5  ;;  %v386_v36 = vld [vmem:[#allocation9 + $0x2] ss:$0 sm:$0xff] }
  0x60   :  { %425 = vmatprep.subr.bf16.mxu1 %v610_v0  ;;  %442 = vmatpush3.bf16.msra.mxu0 %v479_v12 }
  0x61   :  { %443 = vmatprep.subr.bf16.mxu0 %v610_v0 }
  0x63   :  { %426 = vmatpush3.bf16.msra.mxu1 %v473_v6 }
  0x64   :  { %427 = vmatprep.subr.bf16.mxu1 %v610_v0  ;;  %444 = vmatpush3.bf16.msra.mxu0 %v480_v13 }
  0x65   :  { %445 = vmatprep.subr.bf16.mxu0 %v610_v0 }
  0x67   :  { %428 = vmatpush3.bf16.msra.mxu1 %v474_v7 }
  0x68   :  { %429 = vmatprep.subr.bf16.mxu1 %v610_v0  ;;  %446 = vmatpush3.bf16.msra.mxu0 %v481_v14 }
  0x69   :  { %447 = vmatprep.subr.bf16.mxu0 %v610_v0 }
  0x6b   :  { %430 = vmatpush3.bf16.msra.mxu1 %v475_v8 }
  0x6c   :  { %431 = vmatprep.subr.bf16.mxu1 %v610_v0  ;;  %448 = vmatpush3.bf16.msra.mxu0 %v482_v15 }
  0x6d   :  { %449 = vmatprep.subr.bf16.mxu0 %v610_v0 }
  0x6f   :  { %432 = vmatpush3.bf16.msra.mxu1 %v476_v9 }
  0x70   :  { %433 = vmatprep.subr.bf16.mxu1 %v610_v0  ;;  %450 = vmatpush3.bf16.msra.mxu0 %v483_v16 }
  0x71   :  { %451 = vmatprep.subr.bf16.mxu0 %v610_v0 }
  0x73   :  { %434 = vmatpush3.bf16.msra.mxu1 %v477_v10 }
  0x74   :  { %435 = vmatprep.subr.bf16.mxu1 %v610_v0  ;;  %452 = vmatpush3.bf16.msra.mxu0 %v484_v17 }
  0x75   :  { %453 = vmatprep.subr.bf16.mxu0 %v610_v0 }
  0x77   :  { %436 = vmatpush3.bf16.msra.mxu1 %v478_v11 }
  0x78   :  { %454 = vmatpush3.bf16.msra.mxu0 %v485_v26 }
  0x79   :  { %455 = vmatprep.subr.bf16.mxu0 %v610_v0 }
  0x7c   :  { %456 = vmatpush3.bf16.msra.mxu0 %v486_v27 }
 0x131   :  { %v140_v19 = vpop.f32.mrb[0].mxu0 }
 0x132   :  { %v141_v20 = vadd.f32 %v374_v18, %v140_v19  ;;  %v419_v21 = vpop.f32.mrb[1].mxu0 }
 0x133   :  { %v143_v22 = vpop.f32.mrb[2].mxu0 }
 0x134   :  { %v146_v23 = vmax.f32 %v141_v20, 0.0  ;;  %v420_v24 = vpop.f32.mrb[3].mxu0 }
 0x136   :  { %v147_v25 = vpack.c.bf16 %v146_v23, %v146_v23 }
 0x138   :  { %438 = vmatmul.mubr.bf16.vlgmr.msra.gmra.mrb[0].mxu1 %v147_v25 }
 0x20b   :  { %v250_v29 = vpop.f32.mrb[0].mxu1 }
 0x20c   :  { %v251_v30 = vadd.f32 %v377_v28, %v250_v29  ;;  %v439_v31 = vpop.f32.mrb[1].mxu1 }
 0x20d   :  { %v253_v32 = vpop.f32.mrb[2].mxu1 }
 0x20e   :  { %v256_v33 = vmax.f32 %v251_v30, 0.0  ;;  %v440_v34 = vpop.f32.mrb[3].mxu1 }
 0x210   :  { %v257_v35 = vpack.c.bf16 %v256_v33, %v256_v33 }
 0x212   :  { %458 = vmatmul.mubr.bf16.vlgmr.msra.gmra.mrb[4].mxu0 %v257_v35 }
 0x2e5   :  { %v360_v37 = vpop.f32.mrb[4].mxu0 }
 0x2e6   :  { %v361_v38 = vadd.f32 %v386_v36, %v360_v37  ;;  %v459_v39 = vpop.f32.mrb[5].mxu0 }
 0x2e7   :  { %v363_v40 = vpop.f32.mrb[6].mxu0 }
 0x2e8   :  { %366 = vst [vmem:[%s739_s5] sm:$0xff] %v361_v38  ;;  %v460_v41 = vpop.f32.mrb[7].mxu0 }
 0x2e9   :  { %371 = vsyncpa [#allocation3], 1 }
 0x2ea   :  { %372 = vsyncpa [#allocation5], 1 }
 0x2eb   :  { %373 = vsyncpa [#allocation8], 1 }

// kernel: simple_dqn_forward.1
= control target key start
LH: loop header
LB: loop body
LE: loop exit
PB: predicated region body
PF: predicated region fallthrough
CT: control target
= control target key end

     0   :  { %10 = vsyncpa [#allocation3], 0  ;;  %s734_s0 = inlined_call_operand.hbm [shape: f32[8,16], index: 0, kind: input, shape index: {}]   ;;  %s735_s1 = inlined_call_operand.hbm [shape: bf16[16,128], index: 1, kind: input, shape index: {}]   ;;  %s736_s2 = inlined_call_operand.hbm [shape: bf16[128,128], index: 2, kind: input, shape index: {}]   ;;  %s737_s3 = inlined_call_operand.hbm [shape: bf16[128,128], index: 3, kind: input, shape index: {}]   ;;  %s738_s4 = inlined_call_operand.hbm [shape: f32[3,128], index: 4, kind: input, shape index: {}]   ;;  %s739_s5 = inlined_call_operand.vmem [shape: f32[8,128], index: 5, kind: output, shape index: {}]  }
   0x1   :  { %11 = vsyncpa [#allocation5], 0 }
   0x2   :  { %12 = vsyncpa [#allocation8], 0  ;;  %s603_s18 = smov [#allocation4]   ;;  %s487_s22 = scalar_lea.hbm %s735_s1, 128 }
   0x3   :  { %s28_s19 = sshll.u32 %s603_s18, 4  ;;  %p488_p0 = scmp.ne.s32.totalorder %s735_s1, %s487_s22  ;;  %s29_s19 = int_to_ptr.vmem [resolvable:$true] %s28_s19 }
   0x4   :  { %p491_p1 = scmp.lt.u32.totalorder %s487_s22, %s735_s1 }
   0x6   :  { %p493_p2 = pnand %p491_p1, %p488_p0 }
   0x8   :  { %496 = shalt.err (!%p493_p2)
}
   0x9   :  { %s497_s27 = scalar_lea.vmem %s29_s19, 128  ;;  %p502_p4 = scmp.lt.s32.totalorder %s29_s19, %s29_s19 }
   0xa   :  { %p498_p3 = scmp.ne.s32.totalorder %s29_s19, %s497_s27  ;;  %p503_p5 = scmp.lt.s32.totalorder %s497_s27, %s497_s27 }
   0xc   :  { %p504_p6 = por %p503_p5, %p502_p4 }
   0xe   :  { %p505_p7 = pnand %p504_p6, %p498_p3 }
  0x10   :  { %508 = shalt.err (!%p505_p7)
}
  0x11   :  { %s604_s28 = smov 64   ;;  %s605_s29 = smov 4  }
  0x12   :  { %34 = dma.hbm_to_vmem [thread:$0]  %s735_s1, 128, %s29_s19, [#allocation5], %s604_s28, %s604_s28, %s605_s29  }
  0x13   :  { %s606_s7 = smov [#allocation7]   ;;  %s607_s9 = smov [#allocation2]  }
  0x14   :  { %s52_s8 = sshll.u32 %s606_s7, 4  ;;  %s19_s10 = sshll.u32 %s607_s9, 4  ;;  %s53_s8 = int_to_ptr.vmem [resolvable:$true] %s52_s8  ;;  %s20_s10 = int_to_ptr.vmem [resolvable:$true] %s19_s10 }
  0x15   :  { %s509_s13 = scalar_lea.hbm %s737_s3, 1024 }
  0x16   :  { %p510_p8 = scmp.ne.s32.totalorder %s737_s3, %s509_s13  ;;  %p513_p9 = scmp.lt.u32.totalorder %s509_s13, %s737_s3 }
  0x18   :  { %p515_p10 = pnand %p513_p9, %p510_p8 }
  0x1a   :  { %518 = shalt.err (!%p515_p10)
}
  0x1b   :  { %s519_s1 = scalar_lea.vmem %s53_s8, 1024  ;;  %p524_p12 = scmp.lt.s32.totalorder %s53_s8, %s53_s8 }
  0x1c   :  { %p520_p11 = scmp.ne.s32.totalorder %s53_s8, %s519_s1  ;;  %p525_p13 = scmp.lt.s32.totalorder %s519_s1, %s519_s1 }
  0x1e   :  { %p526_p0 = por %p525_p13, %p524_p12 }
  0x20   :  { %p527_p1 = pnand %p526_p0, %p520_p11 }
  0x22   :  { %530 = shalt.err (!%p527_p1)
}
  0x23   :  { %58 = dma.hbm_to_vmem [thread:$0]  %s737_s3, 1024, %s53_s8, [#allocation8], %s604_s28, %s604_s28, %s605_s29  }
  0x24   :  { %s531_s22 = scalar_lea.hbm %s734_s0, 128 }
  0x25   :  { %p532_p2 = scmp.ne.s32.totalorder %s734_s0, %s531_s22  ;;  %p535_p3 = scmp.lt.u32.totalorder %s531_s22, %s734_s0 }
  0x27   :  { %p537_p4 = pnand %p535_p3, %p532_p2 }
  0x29   :  { %540 = shalt.err (!%p537_p4)
}
  0x2a   :  { %s541_s27 = scalar_lea.vmem %s20_s10, 128  ;;  %p546_p6 = scmp.lt.s32.totalorder %s20_s10, %s20_s10 }
  0x2b   :  { %p542_p5 = scmp.ne.s32.totalorder %s20_s10, %s541_s27  ;;  %p547_p7 = scmp.lt.s32.totalorder %s541_s27, %s541_s27 }
  0x2d   :  { %p548_p8 = por %p547_p7, %p546_p6 }
  0x2f   :  { %p549_p9 = pnand %p548_p8, %p542_p5 }
  0x31   :  { %552 = shalt.err (!%p549_p9)
}
  0x32   :  { %22 = dma.hbm_to_vmem [thread:$0]  %s734_s0, 128, %s20_s10, [#allocation3]  }
  0x33   :  { %s608_s6 = smov [#allocation6]   ;;  %s609_s8 = smov [#allocation9]  }
  0x34   :  { %s40_s7 = sshll.u32 %s608_s6, 4  ;;  %s65_s9 = sshll.u32 %s609_s8, 4  ;;  %s41_s7 = int_to_ptr.vmem [resolvable:$true] %s40_s7  ;;  %s66_s9 = int_to_ptr.vmem [resolvable:$true] %s65_s9 }
  0x35   :  { %s553_s13 = scalar_lea.hbm %s736_s2, 1024 }
  0x36   :  { %p554_p10 = scmp.ne.s32.totalorder %s736_s2, %s553_s13  ;;  %p557_p11 = scmp.lt.u32.totalorder %s553_s13, %s736_s2 }
  0x38   :  { %p559_p12 = pnand %p557_p11, %p554_p10 }
  0x3a   :  { %562 = shalt.err (!%p559_p12)
}
  0x3b   :  { %s563_s0 = scalar_lea.vmem %s41_s7, 1024  ;;  %p568_p0 = scmp.lt.s32.totalorder %s41_s7, %s41_s7 }
  0x3c   :  { %p564_p13 = scmp.ne.s32.totalorder %s41_s7, %s563_s0  ;;  %p569_p1 = scmp.lt.s32.totalorder %s563_s0, %s563_s0 }
  0x3e   :  { %p570_p2 = por %p569_p1, %p568_p0 }
  0x40   :  { %p571_p3 = pnand %p570_p2, %p564_p13 }
  0x42   :  { %574 = shalt.err (!%p571_p3)
}
  0x43   :  { %46 = dma.hbm_to_vmem [thread:$0]  %s736_s2, 1024, %s41_s7, [#allocation5], %s604_s28, %s604_s28, %s605_s29  }
  0x44   :  { %s575_s20 = scalar_lea.hbm %s738_s4, 64 }
  0x45   :  { %p576_p4 = scmp.ne.s32.totalorder %s738_s4, %s575_s20  ;;  %p579_p5 = scmp.lt.u32.totalorder %s575_s20, %s738_s4 }
  0x47   :  { %p581_p6 = pnand %p579_p5, %p576_p4 }
  0x49   :  { %584 = shalt.err (!%p581_p6)
}
  0x4a   :  { %s585_s25 = scalar_lea.vmem %s66_s9, 64  ;;  %p590_p8 = scmp.lt.s32.totalorder %s66_s9, %s66_s9 }
  0x4b   :  { %p586_p7 = scmp.ne.s32.totalorder %s66_s9, %s585_s25  ;;  %p591_p9 = scmp.lt.s32.totalorder %s585_s25, %s585_s25 }
  0x4d   :  { %p592_p10 = por %p591_p9, %p590_p8 }
  0x4f   :  { %p593_p11 = pnand %p592_p10, %p586_p7 }
  0x51   :  { %596 = shalt.err (!%p593_p11)
}
  0x52   :  { %68 = dma.hbm_to_vmem [thread:$0]  %s738_s4, 64, %s66_s9, [#allocation8]  }
  0x53   :  { %597 = dma.done.wait [#allocation3], 128  }
  0x54   :  { %598 = vsyncadd [#allocation3], 4294967168 }
  0x55   :  { %599 = dma.done.wait [#allocation5], 1152  }
  0x56   :  { %600 = vsyncadd [#allocation5], 4294966144 }
  0x57   :  { %601 = dma.done.wait [#allocation8], 1088  }
  0x58   :  { %602 = vsyncadd [#allocation8], 4294966208  ;;  %v610_v0 = vmov 0.0   ;;  %vm611_vm0 = vmmov 0   ;;  %v470_v1 = vld [vmem:[#allocation4] sm:$0xff]   ;;  %v85_v2 = vld [vmem:[#allocation2] sm:$0xff] }
  0x59   :  { %415 = vmatprep.subr.bf16.mxu0 %v610_v0  ;;  %417 = vmatprep.mubr.msk.bf16.mxu0 %vm611_vm0, %v610_v0  ;;  %v86_v3 = vpack.c.bf16 %v85_v2, %v85_v2  ;;  %vm102_vm1 = vcmask 130048   ;;  %v471_v4 = vld [vmem:[#allocation6] sm:$0xff]   ;;  %v472_v5 = vld [vmem:[#allocation6 + $0x8] sm:$0xff]   ;;  %v473_v6 = vld [vmem:[#allocation6 + $0x10] sm:$0xff]  }
  0x5a   :  { %421 = vmatprep.subr.bf16.mxu1 %v610_v0  ;;  %437 = vmatprep.mubr.msk.bf16.mxu1 %vm611_vm0, %v610_v0  ;;  %v474_v7 = vld [vmem:[#allocation6 + $0x18] sm:$0xff]   ;;  %v475_v8 = vld [vmem:[#allocation6 + $0x20] sm:$0xff]   ;;  %v476_v9 = vld [vmem:[#allocation6 + $0x28] sm:$0xff]  }
  0x5b   :  { %416 = vmatpush3.bf16.msra.mxu0 %v470_v1  ;;  %422 = vmatpush3.bf16.msra.mxu1 %v471_v4  ;;  %v477_v10 = vld [vmem:[#allocation6 + $0x30] sm:$0xff]   ;;  %v478_v11 = vld [vmem:[#allocation6 + $0x38] sm:$0xff]   ;;  %v479_v12 = vld [vmem:[#allocation7] sm:$0xff]  }
  0x5c   :  { %441 = vmatprep.subr.bf16.mxu0 %v610_v0  ;;  %423 = vmatprep.subr.bf16.mxu1 %v610_v0  ;;  %v480_v13 = vld [vmem:[#allocation7 + $0x8] sm:$0xff]   ;;  %v481_v14 = vld [vmem:[#allocation7 + $0x10] sm:$0xff]   ;;  %v482_v15 = vld [vmem:[#allocation7 + $0x18] sm:$0xff]  }
  0x5d   :  { %v483_v16 = vld [vmem:[#allocation7 + $0x20] sm:$0xff]   ;;  %v484_v17 = vld [vmem:[#allocation7 + $0x28] sm:$0xff]   ;;  %v485_v26 = vld [vmem:[#allocation7 + $0x30] sm:$0xff]  }
  0x5e   :  { %418 = vmatmul.mubr.msk.bf16.vlgmr.msra.gmra.mrb[0].mxu0 %vm102_vm1, %v86_v3  ;;  %v374_v18 = vld [vmem:[#allocation9] ss:$0 sm:$0xff]  ;;  %v486_v27 = vld [vmem:[#allocation7 + $0x38] sm:$0xff]   ;;  %v377_v28 = vld [vmem:[#allocation9 + $0x1] ss:$0 sm:$0xff] }
  0x5f   :  { %457 = vmatprep.mubr.msk.bf16.mxu0 %vm611_vm0, %v610_v0  ;;  %424 = vmatpush3.bf16.msra.mxu1 %v472_v5  ;;  %v386_v36 = vld [vmem:[#allocation9 + $0x2] ss:$0 sm:$0xff] }
  0x60   :  { %425 = vmatprep.subr.bf16.mxu1 %v610_v0  ;;  %442 = vmatpush3.bf16.msra.mxu0 %v479_v12 }
  0x61   :  { %443 = vmatprep.subr.bf16.mxu0 %v610_v0 }
  0x63   :  { %426 = vmatpush3.bf16.msra.mxu1 %v473_v6 }
  0x64   :  { %427 = vmatprep.subr.bf16.mxu1 %v610_v0  ;;  %444 = vmatpush3.bf16.msra.mxu0 %v480_v13 }
  0x65   :  { %445 = vmatprep.subr.bf16.mxu0 %v610_v0 }
  0x67   :  { %428 = vmatpush3.bf16.msra.mxu1 %v474_v7 }
  0x68   :  { %429 = vmatprep.subr.bf16.mxu1 %v610_v0  ;;  %446 = vmatpush3.bf16.msra.mxu0 %v481_v14 }
  0x69   :  { %447 = vmatprep.subr.bf16.mxu0 %v610_v0 }
  0x6b   :  { %430 = vmatpush3.bf16.msra.mxu1 %v475_v8 }
  0x6c   :  { %431 = vmatprep.subr.bf16.mxu1 %v610_v0  ;;  %448 = vmatpush3.bf16.msra.mxu0 %v482_v15 }
  0x6d   :  { %449 = vmatprep.subr.bf16.mxu0 %v610_v0 }
  0x6f   :  { %432 = vmatpush3.bf16.msra.mxu1 %v476_v9 }
  0x70   :  { %433 = vmatprep.subr.bf16.mxu1 %v610_v0  ;;  %450 = vmatpush3.bf16.msra.mxu0 %v483_v16 }
  0x71   :  { %451 = vmatprep.subr.bf16.mxu0 %v610_v0 }
  0x73   :  { %434 = vmatpush3.bf16.msra.mxu1 %v477_v10 }
  0x74   :  { %435 = vmatprep.subr.bf16.mxu1 %v610_v0  ;;  %452 = vmatpush3.bf16.msra.mxu0 %v484_v17 }
  0x75   :  { %453 = vmatprep.subr.bf16.mxu0 %v610_v0 }
  0x77   :  { %436 = vmatpush3.bf16.msra.mxu1 %v478_v11 }
  0x78   :  { %454 = vmatpush3.bf16.msra.mxu0 %v485_v26 }
  0x79   :  { %455 = vmatprep.subr.bf16.mxu0 %v610_v0 }
  0x7c   :  { %456 = vmatpush3.bf16.msra.mxu0 %v486_v27 }
 0x131   :  { %v140_v19 = vpop.f32.mrb[0].mxu0 }
 0x132   :  { %v141_v20 = vadd.f32 %v374_v18, %v140_v19  ;;  %v419_v21 = vpop.f32.mrb[1].mxu0 }
 0x133   :  { %v143_v22 = vpop.f32.mrb[2].mxu0 }
 0x134   :  { %v146_v23 = vmax.f32 %v141_v20, 0.0  ;;  %v420_v24 = vpop.f32.mrb[3].mxu0 }
 0x136   :  { %v147_v25 = vpack.c.bf16 %v146_v23, %v146_v23 }
 0x138   :  { %438 = vmatmul.mubr.bf16.vlgmr.msra.gmra.mrb[0].mxu1 %v147_v25 }
 0x20b   :  { %v250_v29 = vpop.f32.mrb[0].mxu1 }
 0x20c   :  { %v251_v30 = vadd.f32 %v377_v28, %v250_v29  ;;  %v439_v31 = vpop.f32.mrb[1].mxu1 }
 0x20d   :  { %v253_v32 = vpop.f32.mrb[2].mxu1 }
 0x20e   :  { %v256_v33 = vmax.f32 %v251_v30, 0.0  ;;  %v440_v34 = vpop.f32.mrb[3].mxu1 }
 0x210   :  { %v257_v35 = vpack.c.bf16 %v256_v33, %v256_v33 }
 0x212   :  { %458 = vmatmul.mubr.bf16.vlgmr.msra.gmra.mrb[4].mxu0 %v257_v35 }
 0x2e5   :  { %v360_v37 = vpop.f32.mrb[4].mxu0 }
 0x2e6   :  { %v361_v38 = vadd.f32 %v386_v36, %v360_v37  ;;  %v459_v39 = vpop.f32.mrb[5].mxu0 }
 0x2e7   :  { %v363_v40 = vpop.f32.mrb[6].mxu0 }
 0x2e8   :  { %366 = vst [vmem:[%s739_s5] sm:$0xff] %v361_v38  ;;  %v460_v41 = vpop.f32.mrb[7].mxu0 }
 0x2e9   :  { %371 = vsyncpa [#allocation3], 1 }
 0x2ea   :  { %372 = vsyncpa [#allocation5], 1 }
 0x2eb   :  { %373 = vsyncpa [#allocation8], 1 }

</bundles_post_ra>
